<compile_context>
chip_gen: v7x
topology: tpu7x:2x2x1
jax: 0.10.0
libtpu: 0.0.40
codegen_flags: <defaults>
</compile_context>

<pallas_src>
import functools

import jax
import jax.numpy as jnp
from jax import lax
from jax.experimental import pallas as pl
from jax.experimental.pallas import tpu as pltpu


def _round_up(x: int, m: int) -> int:
    return ((x + m - 1) // m) * m


def _cdiv(a: int, b: int) -> int:
    return (a + b - 1) // b


def _tagger_kernel(x_ref, w1_ref, b1_ref, w2t_ref, b2t_ref, out_ref):
    # x_ref:   (TB, D_in)   f32   -- raw input tile, cast to bf16 here
    # w1_ref:  (D_in, H)    bf16
    # b1_ref:  (1, H)       f32
    # w2t_ref: (O_pad, H)   bf16  -- transposed output weights, padded rows = 0
    # b2t_ref: (O_pad, 1)   f32   -- padded rows = -1e9
    # out_ref: (O_pad, TB)  f32   -- class-major log-probs
    x_bf16 = x_ref[...].astype(jnp.bfloat16)

    # Hidden layer: bf16 MXU matmul, f32 accumulation; bias + tanh in f32.
    h = jnp.tanh(
        jnp.dot(x_bf16, w1_ref[...], preferred_element_type=jnp.float32)
        + b1_ref[...]
    )  # (TB, H) f32

    # Output layer, class-major: contract the hidden dim of (O_pad, H) and
    # (TB, H) -> (O_pad, TB).  Same transposed-RHS contraction pattern as
    # q @ k^T in attention kernels; no transpose is materialized.
    logits_t = (
        lax.dot_general(
            w2t_ref[...],
            h.astype(jnp.bfloat16),
            dimension_numbers=(((1,), (1,)), ((), ())),
            preferred_element_type=jnp.float32,
        )
        + b2t_ref[...]
    )  # (O_pad, TB) f32; padded class rows sit at ~-1e9

    # Numerically stable log_softmax over the class (sublane) axis.  Padded
    # class rows contribute exp(-1e9 - m) == 0, so normalization over the
    # real classes is exact.
    m = jnp.max(logits_t, axis=0, keepdims=True)
    shifted = logits_t - m
    lse = jnp.log(jnp.sum(jnp.exp(shifted), axis=0, keepdims=True))
    out_ref[...] = shifted - lse


def _forward_class_major(x, w1, b1, w2, b2, *, block_b: int = 2048):
    """Returns class-major log-probs of shape (O_pad, B), O_pad = round_up(O, 8).

    x: (B, D_in) f32; w1: (D_in, H); b1: (1, H); w2: (H, O); b2: (1, O).
    Weights are stored (in_features, out_features), i.e. transposed w.r.t.
    PyTorch's nn.Linear storage.
    Rows [O:O_pad) of the result are padding and must be ignored.
    """
    B, D_in = x.shape
    H = w1.shape[1]
    O = w2.shape[1]
    O_pad = _round_up(O, 8)

    # ---- tiny, one-off weight prep (negligible HBM traffic; x untouched) ----
    x = x.astype(jnp.float32)                      # no-op if already f32
    w1_b = w1.astype(jnp.bfloat16)                 # (D_in, H)
    b1_f = b1.astype(jnp.float32).reshape(1, H)
    w2t_b = (
        jnp.zeros((O_pad, H), jnp.bfloat16)
        .at[:O, :].set(jnp.transpose(w2).astype(jnp.bfloat16))
    )
    b2t_f = (
        jnp.full((O_pad, 1), -1e9, jnp.float32)
        .at[:O, 0].set(b2.astype(jnp.float32).reshape(O))
    )

    # ---- batch tiling: balanced tiles; >= ~4 tiles when possible so v7x's
    # two TensorCores both get work; TB multiple of 128 when multi-tile so the
    # class-major output blocks stay lane-dense; one full tile otherwise. ----
    n_tiles = max(_cdiv(B, block_b), min(4, _cdiv(B, 128)))
    if n_tiles <= 1:
        TB = B                                     # full-dim block (any B legal)
    else:
        TB = _round_up(_cdiv(B, n_tiles), 128)
        if TB >= B:
            TB = B
    grid = (_cdiv(B, TB),)                         # edge block is masked by Pallas

    out_cm = pl.pallas_call(
        _tagger_kernel,
        out_shape=jax.ShapeDtypeStruct((O_pad, B), jnp.float32),
        grid=grid,
        in_specs=[
            pl.BlockSpec((TB, D_in), lambda i: (i, 0)),   # x: batch-tiled, f32
            pl.BlockSpec((D_in, H), lambda i: (0, 0)),    # W1: VMEM-resident
            pl.BlockSpec((1, H), lambda i: (0, 0)),       # b1: VMEM-resident
            pl.BlockSpec((O_pad, H), lambda i: (0, 0)),   # W2^T: VMEM-resident
            pl.BlockSpec((O_pad, 1), lambda i: (0, 0)),   # b2^T: VMEM-resident
        ],
        out_specs=pl.BlockSpec((O_pad, TB), lambda i: (0, i)),  # class-major
        compiler_params=pltpu.CompilerParams(
            dimension_semantics=("parallel",),   # v7x: shard batch tiles across TCs
            vmem_limit_bytes=32 * 1024 * 1024,   # safe on v5e/v6e/v7x; usage ~MBs
        ),
    )(x, w1_b, b1_f, w2t_b, b2t_f)
    return out_cm


# Class-major entry point for consumers that can fuse the slice themselves
# (e.g. an NLL loss gathering one row per column).
tagger_forward_class_major = jax.jit(
    _forward_class_major, static_argnames=("block_b",)
)


@functools.partial(jax.jit, static_argnames=("block_b",))
def tagger_forward(x, w1, b1, w2, b2, *, block_b: int = 2048):
    """Batch-major forward matching the PyTorch module: (B, O) f32 log-probs."""
    O = w2.shape[1]
    out_cm = _forward_class_major(x, w1, b1, w2, b2, block_b=block_b)
    # Tiny fused epilogue under jit: drop padded class rows, go batch-major.
    return jnp.transpose(out_cm[:O, :])


def _reference_forward_bf16(x, w1, b1, w2, b2):
    """Reference mirroring the kernel's bf16 MXU-operand rounding (tight check)."""
    xf = x.astype(jnp.bfloat16).astype(jnp.float32)
    w1f = w1.astype(jnp.bfloat16).astype(jnp.float32)
    w2f = w2.astype(jnp.bfloat16).astype(jnp.float32)
    h = jnp.tanh(jnp.dot(xf, w1f, precision=jax.lax.Precision.HIGHEST) + b1)
    hf = h.astype(jnp.bfloat16).astype(jnp.float32)
    logits = jnp.dot(hf, w2f, precision=jax.lax.Precision.HIGHEST) + b2
    return jax.nn.log_softmax(logits, axis=1)


def _reference_forward_f32(x, w1, b1, w2, b2):
    """Nominal full-f32 forward (loose semantic check)."""
    h = jnp.tanh(jnp.dot(x, w1, precision=jax.lax.Precision.HIGHEST) + b1)
    logits = jnp.dot(h, w2, precision=jax.lax.Precision.HIGHEST) + b2
    return jax.nn.log_softmax(logits, axis=1)


if __name__ == "__main__":
    # Window-based tagger shapes: window_size=5, embedding dim=50
    #   input_size = 5 * 50 = 250, hidden_size = 32, output_size = 10 tags
    window_size = 5
    emb_dim = 50
    input_size = window_size * emb_dim   # 250
    hidden_size = 32
    output_size = 10

    key = jax.random.PRNGKey(0)
    kx, kw1, kb1, kw2, kb2, kx2 = jax.random.split(key, 6)

    # Deterministic init mimicking nn.Linear's U(-1/sqrt(fan_in), +1/sqrt(fan_in))
    bound1 = 1.0 / (input_size ** 0.5)
    bound2 = 1.0 / (hidden_size ** 0.5)
    w1 = jax.random.uniform(kw1, (input_size, hidden_size), jnp.float32, -bound1, bound1)
    b1 = jax.random.uniform(kb1, (1, hidden_size), jnp.float32, -bound1, bound1)
    w2 = jax.random.uniform(kw2, (hidden_size, output_size), jnp.float32, -bound2, bound2)
    b2 = jax.random.uniform(kb2, (1, output_size), jnp.float32, -bound2, bound2)

    # ---- check 1: small demo batch (single full-batch tile) ----
    batch_size = 8
    x = jax.random.normal(kx, (batch_size, input_size), jnp.float32)

    out = jax.block_until_ready(tagger_forward(x, w1, b1, w2, b2))
    assert out.shape == (batch_size, output_size)

    ref_bf16 = _reference_forward_bf16(x, w1, b1, w2, b2)
    ref_f32 = _reference_forward_f32(x, w1, b1, w2, b2)
    assert jnp.allclose(out, ref_bf16, atol=2e-3, rtol=1e-3)
    assert jnp.allclose(out, ref_f32, atol=5e-2)

    # ---- check 2: ragged batch with multiple 128-wide batch tiles + masked
    #      edge block (exercises the pipelined grid and class-major stores) ----
    batch_size2 = 300
    x2 = jax.random.normal(kx2, (batch_size2, input_size), jnp.float32)
    out2 = jax.block_until_ready(
        tagger_forward(x2, w1, b1, w2, b2, block_b=128)
    )
    assert out2.shape == (batch_size2, output_size)
    ref2 = _reference_forward_bf16(x2, w1, b1, w2, b2)
    assert jnp.allclose(out2, ref2, atol=2e-3, rtol=1e-3)

    # ---- check 3: class-major entry point (what a fused NLL consumer uses) ----
    out_cm = jax.block_until_ready(
        tagger_forward_class_major(x2, w1, b1, w2, b2, block_b=128)
    )
    assert out_cm.shape[1] == batch_size2
    assert jnp.allclose(jnp.transpose(out_cm[:output_size, :]), ref2,
                        atol=2e-3, rtol=1e-3)

    print("KERNEL_OK")
</pallas_src>

<mosaic_0001>
module attributes {stable_mosaic.version = 11 : i64} {
  func.func @_tagger_kernel(%arg0: i32, %arg1: memref<8x250xf32, #tpu.memory_space<vmem>>, %arg2: memref<250x32xbf16, #tpu.memory_space<vmem>>, %arg3: memref<1x32xf32, #tpu.memory_space<vmem>>, %arg4: memref<16x32xbf16, #tpu.memory_space<vmem>>, %arg5: memref<16x1xf32, #tpu.memory_space<vmem>>, %arg6: memref<16x8xf32, #tpu.memory_space<vmem>>) attributes {dimension_semantics = [#tpu.dimension_semantics<parallel>], iteration_bounds = array<i64: 1>, scalar_prefetch = 0 : i64, scratch_operands = 0 : i64, tpu.core_type = #tpu.core_type<tc>, window_params = [{transform_indices = @transform_0, window_bounds = array<i64: 8, 250>}, {pipeline_mode = #tpu.pipeline_mode<synchronous>, transform_indices = @transform_1, window_bounds = array<i64: 250, 32>}, {pipeline_mode = #tpu.pipeline_mode<synchronous>, transform_indices = @transform_2, window_bounds = array<i64: 1, 32>}, {pipeline_mode = #tpu.pipeline_mode<synchronous>, transform_indices = @transform_3, window_bounds = array<i64: 16, 32>}, {pipeline_mode = #tpu.pipeline_mode<synchronous>, transform_indices = @transform_4, window_bounds = array<i64: 16, 1>}, {transform_indices = @transform_5, window_bounds = array<i64: 16, 8>}]} {
    %c0 = arith.constant 0 : index
    %c0_0 = arith.constant 0 : index
    %0 = vector.load %arg1[%c0, %c0_0] : memref<8x250xf32, #tpu.memory_space<vmem>>, vector<8x250xf32>
    %1 = arith.truncf %0 : vector<8x250xf32> to vector<8x250xbf16>
    %c0_1 = arith.constant 0 : index
    %c0_2 = arith.constant 0 : index
    %2 = vector.load %arg2[%c0_1, %c0_2] : memref<250x32xbf16, #tpu.memory_space<vmem>>, vector<250x32xbf16>
    %cst = arith.constant dense<0.000000e+00> : vector<8x32xf32>
    %3 = tpu.matmul %1, %2, %cst {dimension_numbers = #tpu.dot_dimension_numbers<[1], [0], [0], [1], [0, 0, 1, 1], [], []>} : vector<8x250xbf16>, vector<250x32xbf16>, vector<8x32xf32> -> vector<8x32xf32>
    %c0_3 = arith.constant 0 : index
    %c0_4 = arith.constant 0 : index
    %4 = vector.load %arg3[%c0_3, %c0_4] : memref<1x32xf32, #tpu.memory_space<vmem>>, vector<1x32xf32>
    %5 = vector.broadcast %4 : vector<1x32xf32> to vector<8x32xf32>
    %6 = arith.addf %3, %5 : vector<8x32xf32>
    %7 = math.tanh %6 : vector<8x32xf32>
    %c0_5 = arith.constant 0 : index
    %c0_6 = arith.constant 0 : index
    %8 = vector.load %arg4[%c0_5, %c0_6] : memref<16x32xbf16, #tpu.memory_space<vmem>>, vector<16x32xbf16>
    %9 = arith.truncf %7 : vector<8x32xf32> to vector<8x32xbf16>
    %cst_7 = arith.constant dense<0.000000e+00> : vector<16x8xf32>
    %10 = tpu.matmul %8, %9, %cst_7 {dimension_numbers = #tpu.dot_dimension_numbers<[1], [1], [0], [0], [0, 0, 1, 0], [], []>} : vector<16x32xbf16>, vector<8x32xbf16>, vector<16x8xf32> -> vector<16x8xf32>
    %c0_8 = arith.constant 0 : index
    %c0_9 = arith.constant 0 : index
    %11 = vector.load %arg5[%c0_8, %c0_9] : memref<16x1xf32, #tpu.memory_space<vmem>>, vector<16x1xf32>
    %12 = vector.broadcast %11 : vector<16x1xf32> to vector<16x8xf32>
    %13 = arith.addf %10, %12 : vector<16x8xf32>
    %cst_10 = arith.constant dense<0xFF800000> : vector<8xf32>
    %14 = vector.multi_reduction <maximumf>, %13, %cst_10 [0] : vector<16x8xf32> to vector<8xf32>
    %15 = vector.shape_cast %14 : vector<8xf32> to vector<1x8xf32>
    %16 = vector.broadcast %15 : vector<1x8xf32> to vector<16x8xf32>
    %17 = arith.subf %13, %16 : vector<16x8xf32>
    %18 = math.exp %17 : vector<16x8xf32>
    %cst_11 = arith.constant dense<0.000000e+00> : vector<8xf32>
    %19 = vector.multi_reduction <add>, %18, %cst_11 [0] : vector<16x8xf32> to vector<8xf32>
    %20 = vector.shape_cast %19 : vector<8xf32> to vector<1x8xf32>
    %21 = math.log %20 : vector<1x8xf32>
    %22 = vector.broadcast %21 : vector<1x8xf32> to vector<16x8xf32>
    %23 = arith.subf %17, %22 : vector<16x8xf32>
    %c0_12 = arith.constant 0 : index
    %c0_13 = arith.constant 0 : index
    %24 = vector.load %arg6[%c0_12, %c0_13] : memref<16x8xf32, #tpu.memory_space<vmem>>, vector<16x8xf32>
    tpu.vector_store %arg6[%c0_12, %c0_13], %23 {strides = array<i32>} : memref<16x8xf32, #tpu.memory_space<vmem>>, vector<16x8xf32>,
    return
  }
  func.func @transform_0(%arg0: i32) -> (i32, i32) {
    %c0_i32 = arith.constant 0 : i32
    %c0_i32_0 = arith.constant 0 : i32
    return %arg0, %c0_i32 : i32, i32
  }
  func.func @transform_1(%arg0: i32) -> (i32, i32) {
    %c0_i32 = arith.constant 0 : i32
    %c0_i32_0 = arith.constant 0 : i32
    %c0_i32_1 = arith.constant 0 : i32
    return %c0_i32, %c0_i32_0 : i32, i32
  }
  func.func @transform_2(%arg0: i32) -> (i32, i32) {
    %c0_i32 = arith.constant 0 : i32
    %c0_i32_0 = arith.constant 0 : i32
    %c0_i32_1 = arith.constant 0 : i32
    return %c0_i32, %c0_i32_0 : i32, i32
  }
  func.func @transform_3(%arg0: i32) -> (i32, i32) {
    %c0_i32 = arith.constant 0 : i32
    %c0_i32_0 = arith.constant 0 : i32
    %c0_i32_1 = arith.constant 0 : i32
    return %c0_i32, %c0_i32_0 : i32, i32
  }
  func.func @transform_4(%arg0: i32) -> (i32, i32) {
    %c0_i32 = arith.constant 0 : i32
    %c0_i32_0 = arith.constant 0 : i32
    %c0_i32_1 = arith.constant 0 : i32
    return %c0_i32, %c0_i32_0 : i32, i32
  }
  func.func @transform_5(%arg0: i32) -> (i32, i32) {
    %c0_i32 = arith.constant 0 : i32
    %c0_i32_0 = arith.constant 0 : i32
    return %c0_i32, %arg0 : i32, i32
  }
}

</mosaic_0001>

<bundles_post_ra>
// kernel: tagger_forward.1
= control target key start
LH: loop header
LB: loop body
LE: loop exit
PB: predicated region body
PF: predicated region fallthrough
CT: control target
= control target key end

     0   :  { %vm159_vm0 = vcmask 998400   ;;  %vm163_vm1 = vcmask 1044480   ;;  %v391_v20 = vmov 0.0   ;;  %vm392_vm2 = vmmov 0   ;;  %s502_s1 = inlined_call_operand.vmem [shape: bf16[250,32], index: 1, kind: input, shape index: {}]   ;;  %s503_s0 = inlined_call_operand.vmem [shape: f32[8,250], index: 0, kind: input, shape index: {}]   ;;  %s504_s3 = inlined_call_operand.vmem [shape: bf16[16,32], index: 3, kind: input, shape index: {}]   ;;  %s505_s4 = inlined_call_operand.vmem [shape: f32[16,1], index: 4, kind: input, shape index: {}]   ;;  %s506_s2 = inlined_call_operand.vmem [shape: f32[1,32], index: 2, kind: input, shape index: {}]   ;;  %s507_s5 = inlined_call_operand.vmem [shape: f32[16,8], index: 5, kind: output, shape index: {}]  }
   0x1   :  { %v366_v0 = vld [vmem:[%s502_s1 + $0x40] sm:$0xff]   ;;  %v368_v2 = vld [vmem:[%s502_s1 + $0x48] sm:$0xff]   ;;  %v370_v4 = vld [vmem:[%s502_s1 + $0x50] sm:$0xff]   ;;  %355 = vmatprep.subr.bf16.mxu1 %v391_v20  ;;  %357 = vmatprep.mubr.msk.bf16.mxu1 %vm392_vm2, %v391_v20  ;;  %v393_v21 = vmov 0   ;;  %vm228_vm3 = vcmask 261120   ;;  %vm276_vm4 = vcmask 64512  }
   0x2   :  { %v367_v1 = vld [vmem:[%s502_s1] sm:$0xff]   ;;  %331 = vmatprep.subr.bf16.mxu0 %v366_v0  ;;  %v369_v3 = vld [vmem:[%s502_s1 + $0x8] sm:$0xff]   ;;  %v371_v5 = vld [vmem:[%s502_s1 + $0x10] sm:$0xff]   ;;  %365 = vset.pattern.permute.xlu0 %v393_v21 }
   0x3   :  { %332 = vmatpush3.bf16.msra.mxu0 %v367_v1  ;;  %v372_v6 = vld [vmem:[%s502_s1 + $0x58] sm:$0xff]   ;;  %v374_v8 = vld [vmem:[%s502_s1 + $0x60] sm:$0xff]   ;;  %v376_v10 = vld [vmem:[%s502_s1 + $0x68] sm:$0xff]  }
   0x4   :  { %333 = vmatprep.subr.bf16.mxu0 %v368_v2  ;;  %v373_v7 = vld [vmem:[%s502_s1 + $0x18] sm:$0xff]   ;;  %v375_v9 = vld [vmem:[%s502_s1 + $0x20] sm:$0xff]   ;;  %v22_v11 = vld [vmem:[%s503_s0 + $0x8] sm:$0xff] }
   0x5   :  { %v24_v12 = vpack.c.bf16 %v22_v11, %v22_v11  ;;  %v377_v13 = vld [vmem:[%s502_s1 + $0x28] sm:$0xff]   ;;  %v378_v14 = vld [vmem:[%s502_s1 + $0x70] sm:$0xff]   ;;  %v380_v16 = vld [vmem:[%s502_s1 + $0x78] sm:$0x1f]  }
   0x6   :  { %v379_v15 = vld [vmem:[%s502_s1 + $0x30] sm:$0xff]   ;;  %v381_v17 = vld [vmem:[%s502_s1 + $0x38] sm:$0xff]   ;;  %v21_v18 = vld [vmem:[%s503_s0] sm:$0xff] }
   0x7   :  { %334 = vmatpush3.bf16.msra.mxu0 %v369_v3  ;;  %328 = vmatprep.mubr.msk.bf16.mxu0 %vm159_vm0, %v24_v12  ;;  %v23_v19 = vpack.c.bf16 %v21_v18, %v21_v18  ;;  %v211_v22 = vld [vmem:[%s505_s4] sm:$0xff]  ;;  %v212_v23 = vld [vmem:[%s505_s4 + $0x8] sm:$0xff] }
   0x8   :  { %335 = vmatprep.subr.bf16.mxu0 %v370_v4  ;;  %215 = vperm.xlu0 %365, %v211_v22   ;;  %v311_v25 = vld [vmem:[%s506_s2] ss:$0 sm:$0xff] }
   0x9   :  { %v382_v34 = vld [vmem:[%s504_s3] sm:$0xff]  }
   0xb   :  { %336 = vmatpush3.bf16.msra.mxu0 %v371_v5 }
   0xc   :  { %337 = vmatprep.subr.bf16.mxu0 %v372_v6  ;;  %220 = vperm.xlu0 %365, %v212_v23  }
   0xf   :  { %338 = vmatpush3.bf16.msra.mxu0 %v373_v7 }
  0x10   :  { %339 = vmatprep.subr.bf16.mxu0 %v374_v8 }
  0x13   :  { %340 = vmatpush3.bf16.msra.mxu0 %v375_v9 }
  0x14   :  { %341 = vmatprep.subr.bf16.mxu0 %v376_v10 }
  0x17   :  { %342 = vmatpush3.bf16.msra.mxu0 %v377_v13 }
  0x18   :  { %343 = vmatprep.subr.bf16.mxu0 %v378_v14 }
  0x1b   :  { %344 = vmatpush3.bf16.msra.mxu0 %v379_v15 }
  0x1c   :  { %361 = vmatprep.subr.msk.bf16.mxu0 %vm163_vm1, %v380_v16 }
  0x1f   :  { %346 = vmatpush3.bf16.msra.mxu0 %v381_v17 }
  0x22   :  { %200 = vmatmul.mubr.bf16.vlgmr.msra.gmra.mrb[0].mxu0 %v23_v19 }
  0x87   :  { %v216_v35 = vpop.permute.xlu0 %215 }
  0x8b   :  { %v221_v39 = vpop.permute.xlu0 %220 }
  0xf5   :  { %v347_v24 = vpop.f32.mrb[0].mxu0 }
  0xf6   :  { %v348_v26 = vpop.f32.mrb[1].mxu0 }
  0xf7   :  { %v349_v27 = vadd.f32 %v348_v26, %v347_v24  ;;  %v350_v28 = vpop.f32.mrb[2].mxu0 }
  0xf8   :  { %v351_v29 = vpop.f32.mrb[3].mxu0 }
  0xf9   :  { %v202_v30 = vadd.f32 %v349_v27, %v311_v25 }
  0xfb   :  { %383 = vtanh.f32 %v202_v30 }
 0x105   :  { %v384_v31 = vpop.eup %383 }
 0x106   :  { %v210_v32 = vpack.c.bf16 %v384_v31, %v384_v31 }
 0x108   :  { %v233_v33 = vsel %vm228_vm3, %v210_v32, 0 }
 0x109   :  { %356 = vmatpush3.bf16.xpose.msra.mxu1 %v233_v33 }
 0x110   :  { %358 = vmatmul.mubr.msk.bf16.vlgmr.msra.gmra.mrb[0].mxu1 %vm228_vm3, %v382_v34 }
 0x1e3   :  { %v269_v36 = vpop.f32.mrb[0].mxu1 }
 0x1e4   :  { %v270_v37 = vadd.f32 %v269_v36, %v216_v35  ;;  %v359_v38 = vpop.f32.mrb[1].mxu1 }
 0x1e5   :  { %v272_v40 = vpop.f32.mrb[2].mxu1 }
 0x1e6   :  { %v273_v41 = vadd.f32 %v272_v40, %v221_v39  ;;  %v360_v42 = vpop.f32.mrb[3].mxu1  ;;  %v277_v43 = vsel %vm276_vm4, %v270_v37, -inf }
 0x1e8   :  { %v278_v44 = vsel %vm276_vm4, %v273_v41, -inf }
 0x1e9   :  { %v279_v45 = vmax.f32 %v277_v43, %v278_v44 }
 0x1eb   :  { %v280_v46 = vrot.slane %v279_v45, 4 }
 0x1ed   :  { %v281_v47 = vmax.f32 %v279_v45, %v280_v46 }
 0x1ef   :  { %v282_v48 = vrot.slane %v281_v47, 2 }
 0x1f1   :  { %v283_v49 = vmax.f32 %v281_v47, %v282_v48 }
 0x1f3   :  { %v284_v50 = vrot.slane %v283_v49, 1 }
 0x1f5   :  { %v285_v51 = vmax.f32 %v283_v49, %v284_v50 }
 0x1f7   :  { %v286_v52 = vsub.f32 %v270_v37, %v285_v51  ;;  %v287_v53 = vsub.f32 %v273_v41, %v285_v51 }
 0x1f9   :  { %v288_v54 = vmul.f32 1.442695, %v286_v52  ;;  %v290_v55 = vmul.f32 1.442695, %v287_v53 }
 0x1fb   :  { %385 = vpow2.f32 %v288_v54 }
 0x1fc   :  { %387 = vpow2.f32 %v290_v55 }
 0x205   :  { %v386_v56 = vpop.eup %385 }
 0x206   :  { %v388_v57 = vpop.eup %387  ;;  %v292_v58 = vsel %vm276_vm4, %v386_v56, 0.0 }
 0x207   :  { %v293_v59 = vsel %vm276_vm4, %v388_v57, 0.0 }
 0x208   :  { %v294_v60 = vadd.f32 %v293_v59, %v292_v58 }
 0x20a   :  { %v295_v61 = vrot.slane %v294_v60, 4 }
 0x20c   :  { %v296_v62 = vadd.f32 %v295_v61, %v294_v60 }
 0x20e   :  { %v297_v63 = vrot.slane %v296_v62, 2 }
 0x210   :  { %v298_v0 = vadd.f32 %v297_v63, %v296_v62 }
 0x212   :  { %v299_v1 = vrot.slane %v298_v0, 1 }
 0x214   :  { %v300_v2 = vadd.f32 %v299_v1, %v298_v0 }
 0x216   :  { %389 = vlog2.f32 %v300_v2 }
 0x220   :  { %v390_v3 = vpop.eup %389 }
 0x221   :  { %v302_v4 = vmul.f32 0.6931472, %v390_v3 }
 0x223   :  { %v303_v5 = vsub.f32 %v286_v52, %v302_v4  ;;  %v304_v6 = vsub.f32 %v287_v53, %v302_v4 }
 0x225   :  { %305 = vst.msk [vmem:[%s507_s5] sm:$0xff] %vm276_vm4, %v303_v5  ;;  %306 = vst.msk [vmem:[%s507_s5 + $0x8] sm:$0xff] %vm276_vm4, %v304_v6 }

</bundles_post_ra>
